<compile_context>
chip_gen: v7x
topology: tpu7x:2x2x1
jax: 0.10.0
libtpu: 0.0.40
codegen_flags: <defaults>
</compile_context>

<pallas_src>
import jax
import jax.numpy as jnp
from jax.experimental import pallas as pl
from jax.experimental.pallas import tpu as pltpu


def _mhc_kernel(scale_ref, bias_ref, x_ref, h_ref):
    # scale_ref / bias_ref are scalar-prefetch refs in SMEM, shape (1,).
    s = scale_ref[0]
    b = bias_ref[0]
    z = s * x_ref[...] + b          # VPU
    h_ref[...] = jax.nn.sigmoid(z)  # exp on EUP, cheap reciprocal path


def _choose_row_tile(rows, lane_width, target_block_bytes):
    """Byte-targeted row tile (multiple of 8), with a megacore-friendly split."""
    bytes_per_row = 4 * lane_width  # f32
    tn = max(8, (target_block_bytes // bytes_per_row) // 8 * 8)
    # Ensure the ("parallel",) axis has >= 4 grid steps when there is enough
    # work, so both of v7x's TensorCores get tiles (neutral on v5e/v6e).
    if rows >= 32:
        per_step = max(8, (rows // 4) // 8 * 8)
        tn = min(tn, per_step)
    # If the whole slab fits in one tile, use the full (exact) extent.
    return min(tn, rows)


def mhc_presentation_forward(x, scaling, bias, *,
                             force_pallas=False,
                             target_block_bytes=4 << 20,
                             small_input_bytes=1 << 18):
    """Pallas forward of MHC_presentation: sigmoid(scaling * x + bias).

    x       : float32 array of any shape (e.g. (batch, n_alleles))
    scaling : (1,) float32 parameter
    bias    : (1,) float32 parameter
    """
    orig_shape = x.shape
    x = x.astype(jnp.float32)
    scaling = jnp.reshape(scaling, (1,)).astype(jnp.float32)
    bias = jnp.reshape(bias, (1,)).astype(jnp.float32)

    total = int(x.size)
    total_bytes = 4 * total

    # Small-input fast path: a pallas_call launch + pipeline prologue dwarfs
    # the data movement; let XLA fuse the elementwise op instead.
    if total_bytes < small_input_bytes and not force_pallas:
        return jax.nn.sigmoid(scaling[0] * x + bias[0])

    # --- Flatten to a wide, lane-dense slab -------------------------------
    lane = None
    for cand in (8192, 4096, 2048, 1024, 512, 256, 128):
        if total % cand == 0:
            lane = cand
            break
    if lane is None:
        # Ragged total: pad the flat vector up to a lane multiple (padding
        # produces harmless sigmoid(bias) values that are sliced off below).
        lane = 1024
        padded_total = -(-total // lane) * lane
        flat = jnp.pad(jnp.reshape(x, (-1,)), (0, padded_total - total))
    else:
        padded_total = total
        flat = jnp.reshape(x, (-1,))
    rows = padded_total // lane
    slab = jnp.reshape(flat, (rows, lane))

    # --- Tile / grid -------------------------------------------------------
    tn = _choose_row_tile(rows, lane, target_block_bytes)
    grid = (pl.cdiv(rows, tn),)

    grid_spec = pltpu.PrefetchScalarGridSpec(
        num_scalar_prefetch=2,  # scaling, bias -> SMEM before the grid runs
        grid=grid,
        in_specs=[
            pl.BlockSpec((tn, lane), lambda i, s_ref, b_ref: (i, 0)),
        ],
        out_specs=pl.BlockSpec((tn, lane), lambda i, s_ref, b_ref: (i, 0)),
    )

    out_slab = pl.pallas_call(
        _mhc_kernel,
        grid_spec=grid_spec,
        out_shape=jax.ShapeDtypeStruct((rows, lane), jnp.float32),
        compiler_params=pltpu.CompilerParams(
            dimension_semantics=("parallel",),
            # 2 streams x 2 buffers x <=4 MiB tile ~= 16 MiB; request 32 MiB
            # scoped VMEM so the choice is safe on every generation (incl.
            # v5e's 16 MiB default and v7x's 64 MiB physical).
            vmem_limit_bytes=32 << 20,
        ),
    )(scaling, bias, slab)

    # --- Un-flatten --------------------------------------------------------
    out_flat = jnp.reshape(out_slab, (-1,))
    if padded_total != total:
        out_flat = out_flat[:total]
    return jnp.reshape(out_flat, orig_shape)


if __name__ == "__main__":
    key = jax.random.PRNGKey(0)
    kx, ks, kb = jax.random.split(key, 3)
    scaling = jax.random.normal(ks, (1,), dtype=jnp.float32)  # nn.Parameter(randn(1))
    bias = jax.random.normal(kb, (1,), dtype=jnp.float32)     # nn.Parameter(randn(1))

    def ref(x):
        return jax.nn.sigmoid(scaling[0] * x + bias[0])

    # 1) Main small example: (batch, n_alleles) MHC-presentation scores.
    x = jax.random.normal(kx, (8, 128), dtype=jnp.float32)
    h = mhc_presentation_forward(x, scaling, bias, force_pallas=True)
    jax.block_until_ready(h)
    assert h.shape == x.shape and h.dtype == x.dtype
    assert jnp.allclose(h, ref(x), atol=1e-5, rtol=1e-5)

    # 2) Ragged size -> exercises the padded flatten path (total % 128 != 0).
    x2 = jax.random.normal(kx, (5, 37), dtype=jnp.float32)
    h2 = mhc_presentation_forward(x2, scaling, bias, force_pallas=True)
    jax.block_until_ready(h2)
    assert h2.shape == x2.shape
    assert jnp.allclose(h2, ref(x2), atol=1e-5, rtol=1e-5)

    # 3) Enough rows for a multi-step ("parallel",) grid (still small: 1 MiB).
    x3 = jax.random.normal(kx, (256, 1024), dtype=jnp.float32)
    h3 = mhc_presentation_forward(x3, scaling, bias, force_pallas=True)
    jax.block_until_ready(h3)
    assert jnp.allclose(h3, ref(x3), atol=1e-5, rtol=1e-5)

    # 4) Default path for tiny input takes the XLA fast path.
    h_fast = mhc_presentation_forward(x, scaling, bias)
    jax.block_until_ready(h_fast)
    assert jnp.allclose(h_fast, ref(x), atol=1e-5, rtol=1e-5)

    print("KERNEL_OK")
</pallas_src>

<mosaic_0001>
module attributes {stable_mosaic.version = 11 : i64} {
  func.func @_mhc_kernel(%arg0: i32, %arg1: memref<1xf32, #tpu.memory_space<smem>>, %arg2: memref<1xf32, #tpu.memory_space<smem>>, %arg3: memref<1x1024xf32, #tpu.memory_space<vmem>>, %arg4: memref<1x1024xf32, #tpu.memory_space<vmem>>) attributes {dimension_semantics = [#tpu.dimension_semantics<parallel>], iteration_bounds = array<i64: 1>, scalar_prefetch = 2 : i64, scratch_operands = 0 : i64, tpu.core_type = #tpu.core_type<tc>, window_params = [{transform_indices = @transform_0, window_bounds = array<i64: 1, 1024>}, {transform_indices = @transform_1, window_bounds = array<i64: 1, 1024>}]} {
    %c0 = arith.constant 0 : index
    %0 = memref.load %arg1[%c0] : memref<1xf32, #tpu.memory_space<smem>>
    %c0_0 = arith.constant 0 : index
    %1 = memref.load %arg2[%c0_0] : memref<1xf32, #tpu.memory_space<smem>>
    %c0_1 = arith.constant 0 : index
    %c0_2 = arith.constant 0 : index
    %2 = vector.load %arg3[%c0_1, %c0_2] : memref<1x1024xf32, #tpu.memory_space<vmem>>, vector<1x1024xf32>
    %3 = vector.broadcast %0 : f32 to vector<1x1024xf32>
    %4 = arith.mulf %3, %2 : vector<1x1024xf32>
    %5 = vector.broadcast %1 : f32 to vector<1x1024xf32>
    %6 = arith.addf %4, %5 : vector<1x1024xf32>
    %7 = arith.negf %6 : vector<1x1024xf32>
    %8 = math.exp %7 : vector<1x1024xf32>
    %cst = arith.constant 1.000000e+00 : f32
    %9 = vector.broadcast %cst : f32 to vector<1x1024xf32>
    %10 = arith.addf %9, %8 : vector<1x1024xf32>
    %11 = arith.divf %9, %10 : vector<1x1024xf32>
    %c0_3 = arith.constant 0 : index
    %c0_4 = arith.constant 0 : index
    %12 = vector.load %arg4[%c0_3, %c0_4] : memref<1x1024xf32, #tpu.memory_space<vmem>>, vector<1x1024xf32>
    tpu.vector_store %arg4[%c0_3, %c0_4], %11 {strides = array<i32>} : memref<1x1024xf32, #tpu.memory_space<vmem>>, vector<1x1024xf32>,
    return
  }
  func.func @transform_0(%arg0: i32, %arg1: memref<1xf32, #tpu.memory_space<smem>>, %arg2: memref<1xf32, #tpu.memory_space<smem>>) -> (i32, i32) {
    %c0_i32 = arith.constant 0 : i32
    %c0_i32_0 = arith.constant 0 : i32
    return %arg0, %c0_i32 : i32, i32
  }
  func.func @transform_1(%arg0: i32, %arg1: memref<1xf32, #tpu.memory_space<smem>>, %arg2: memref<1xf32, #tpu.memory_space<smem>>) -> (i32, i32) {
    %c0_i32 = arith.constant 0 : i32
    %c0_i32_0 = arith.constant 0 : i32
    return %arg0, %c0_i32 : i32, i32
  }
}

</mosaic_0001>

<bundles_post_ra>
// kernel: tpu_custom_call.1
= control target key start
LH: loop header
LB: loop body
LE: loop exit
PB: predicated region body
PF: predicated region fallthrough
CT: control target
= control target key end

     0   :  { %10 = vsyncpa [#allocation6], 0  ;;  %s161_s0 = inlined_call_operand.<no memory space> [shape: f32[1], index: 0, kind: input, shape index: {}]   ;;  %s162_s1 = inlined_call_operand.<no memory space> [shape: f32[1], index: 1, kind: input, shape index: {}]   ;;  %s163_s2 = inlined_call_operand.hbm [shape: f32[1,1024], index: 2, kind: input, shape index: {}]   ;;  %s164_s3 = inlined_call_operand.hbm [shape: f32[1,1024], index: 3, kind: output, shape index: {}]  }
   0x1   :  { %11 = vsyncpa [#allocation7], 0  ;;  %s109_s12 = smov [#allocation5]   ;;  %s61_s16 = scalar_lea.hbm %s163_s2, 128 }
   0x2   :  { %s18_s13 = sshll.u32 %s109_s12, 4  ;;  %p62_p0 = scmp.ne.s32.totalorder %s163_s2, %s61_s16  ;;  %s19_s13 = int_to_ptr.vmem [resolvable:$true] %s18_s13 }
   0x3   :  { %p65_p1 = scmp.lt.u32.totalorder %s61_s16, %s163_s2 }
   0x5   :  { %p67_p2 = pnand %p65_p1, %p62_p0 }
   0x7   :  { %70 = shalt.err (!%p67_p2)
}
   0x8   :  { %s71_s21 = scalar_lea.vmem %s19_s13, 128  ;;  %p76_p4 = scmp.lt.s32.totalorder %s19_s13, %s19_s13 }
   0x9   :  { %p72_p3 = scmp.ne.s32.totalorder %s19_s13, %s71_s21  ;;  %p77_p5 = scmp.lt.s32.totalorder %s71_s21, %s71_s21 }
   0xb   :  { %p78_p6 = por %p77_p5, %p76_p4 }
   0xd   :  { %p79_p7 = pnand %p78_p6, %p72_p3 }
   0xf   :  { %82 = shalt.err (!%p79_p7)
}
  0x10   :  { %21 = dma.hbm_to_vmem [thread:$0]  %s163_s2, 128, %s19_s13, [#allocation6]  }
  0x11   :  { %105 = dma.done.wait [#allocation6], 128  }
  0x12   :  { %106 = vsyncadd [#allocation6], 4294967168  ;;  %v28_v0 = vstv %s161_s0  ;;  %v27_v1 = vld [vmem:[#allocation5] sm:$0xff]  ;;  %v30_v2 = vstv %s162_s1  ;;  %s110_s28 = smov [#allocation8]  }
  0x13   :  { %v29_v3 = vmul.f32 %v28_v0, %v27_v1  ;;  %s45_s2 = sshll.u32 %s110_s28, 4  ;;  %s46_s2 = int_to_ptr.vmem [resolvable:$true] %s45_s2 }
  0x14   :  { %s83_s29 = scalar_lea.vmem %s46_s2, 128  ;;  %p88_p9 = scmp.lt.s32.totalorder %s46_s2, %s46_s2 }
  0x15   :  { %v31_v4 = vadd.f32 %v30_v2, %v29_v3  ;;  %p84_p8 = scmp.ne.s32.totalorder %s46_s2, %s83_s29  ;;  %p89_p10 = scmp.lt.s32.totalorder %s83_s29, %s83_s29 }
  0x17   :  { %v54_v5 = vmul.f32 -1.442695, %v31_v4  ;;  %p90_p11 = por %p89_p10, %p88_p9 }
  0x19   :  { %57 = vpow2.f32 %v54_v5  ;;  %p91_p12 = pnand %p90_p11, %p84_p8 }
  0x23   :  { %v58_v6 = vpop.eup %57 }
  0x24   :  { %v35_v7 = vadd.f32 1.0, %v58_v6 }
  0x26   :  { %59 = vrcp.f32 %v35_v7 }
  0x30   :  { %v60_v8 = vpop.eup %59 }
  0x31   :  { %38 = vst [vmem:[#allocation8] sm:$0xff] %v60_v8 }
  0x32   :  { %94 = shalt.err (!%p91_p12)
}
  0x33   :  { %s95_s30 = scalar_lea.hbm %s164_s3, 128 }
  0x34   :  { %p96_p13 = scmp.ne.s32.totalorder %s164_s3, %s95_s30  ;;  %p99_p0 = scmp.lt.u32.totalorder %s95_s30, %s164_s3 }
  0x36   :  { %p101_p1 = pnand %p99_p0, %p96_p13 }
  0x38   :  { %104 = shalt.err (!%p101_p1)
}
  0x39   :  { %48 = dma.vmem_to_hbm [thread:$0]  %s46_s2, 128, %s164_s3, [#allocation7]  }
  0x3a   :  { %107 = dma.done.wait [#allocation7], 128  }
  0x3b   :  { %108 = vsyncadd [#allocation7], 4294967168 }
  0x3c   :  { %52 = vsyncpa [#allocation6], 1 }
  0x3d   :  { %53 = vsyncpa [#allocation7], 1 }

</bundles_post_ra>
